<compile_context>
chip_gen: v7x
topology: tpu7x:2x2x1
jax: 0.10.0
libtpu: 0.0.40
codegen_flags: <defaults>
</compile_context>

<pallas_src>
import functools

import jax
import jax.numpy as jnp
from jax.experimental import pallas as pl
from jax.experimental.pallas import tpu as pltpu

_LANE = 128
_SUBLANE = 8
_MAX_BLOCK_ROWS = 2048  # (2048, 128) f32 block = 1 MiB per input per step


def _rmse_partial_kernel(yhat_ref, y_ref, out_ref, acc_ref, *,
                         n_elems, block_rows, blocks_per_core):
    c = pl.program_id(0)  # "parallel" (per-TensorCore) axis
    i = pl.program_id(1)  # reduction axis ("arbitrary")

    @pl.when(i == 0)
    def _():
        acc_ref[...] = jnp.zeros_like(acc_ref)

    d = yhat_ref[...].astype(jnp.float32) - y_ref[...].astype(jnp.float32)
    sq = d * d

    # Logical block covered by this grid step.  The index_map clamps the
    # physical DMA in-bounds; correctness comes from masking on these logical
    # flat indices (int32 math -- fine for < 2^31 elements).
    logical_block = c * blocks_per_core + i
    block_elems = block_rows * _LANE
    block_start = logical_block * block_elems
    is_full = block_start + block_elems <= n_elems

    @pl.when(is_full)
    def _():
        # Interior block: pure VPU adds of (8,128) vregs, no masking cost.
        acc_ref[...] += jnp.sum(sq.reshape(-1, _SUBLANE, _LANE), axis=0)

    @pl.when(jnp.logical_not(is_full))
    def _():
        # Boundary (or phantom) block: mask against the true element count.
        row_ids = jax.lax.broadcasted_iota(jnp.int32, (block_rows, _LANE), 0)
        lane_ids = jax.lax.broadcasted_iota(jnp.int32, (block_rows, _LANE), 1)
        flat_ids = block_start + row_ids * _LANE + lane_ids
        masked = jnp.where(flat_ids < n_elems, sq, 0.0)
        acc_ref[...] += jnp.sum(masked.reshape(-1, _SUBLANE, _LANE), axis=0)

    @pl.when(i == pl.num_programs(1) - 1)
    def _():
        out_ref[...] = acc_ref[...].reshape((1, _SUBLANE, _LANE))


def rmse_loss(yhat, y, eps=1e-06):
    """sqrt(mean((yhat - y)^2) + eps), reduced over all elements."""
    assert yhat.shape == y.shape, "RMSELoss expects matching shapes"
    n_elems = int(yhat.size)

    # Flatten (free reshape); keep original dtype -- the kernel upcasts per tile.
    yh = yhat.reshape(-1)
    yt = y.reshape(-1)

    rows = -(-n_elems // _LANE)
    padded = rows * _LANE
    if padded != n_elems:
        # Rare ragged case (numel not a multiple of 128): pad the flat tail so
        # the lane-dense reshape is legal.  The kernel masks on n_elems, so the
        # pad values never contribute.
        yh = jnp.pad(yh, (0, padded - n_elems))
        yt = jnp.pad(yt, (0, padded - n_elems))
    yh2 = yh.reshape(rows, _LANE)
    yt2 = yt.reshape(rows, _LANE)

    # Block sizing: big enough to hit HBM roofline, capped so
    # 2 inputs x 2 buffers x block fits every generation's scoped VMEM.
    block_rows = min(_MAX_BLOCK_ROWS, -(-rows // _SUBLANE) * _SUBLANE)
    total_blocks = -(-rows // block_rows)
    blocks_per_core = -(-total_blocks // 2)

    def in_index_map(c, i):
        # Clamp physically in-bounds; out-of-range logical blocks (odd block
        # counts / phantom second-core work) are fully masked in the kernel.
        return (jnp.minimum(c * blocks_per_core + i, total_blocks - 1), 0)

    kernel = functools.partial(
        _rmse_partial_kernel,
        n_elems=n_elems,
        block_rows=block_rows,
        blocks_per_core=blocks_per_core,
    )

    partials = pl.pallas_call(
        kernel,
        out_shape=jax.ShapeDtypeStruct((2, _SUBLANE, _LANE), jnp.float32),
        grid=(2, blocks_per_core),
        in_specs=[
            pl.BlockSpec((block_rows, _LANE), in_index_map),
            pl.BlockSpec((block_rows, _LANE), in_index_map),
        ],
        out_specs=pl.BlockSpec((1, _SUBLANE, _LANE), lambda c, i: (c, 0, 0)),
        scratch_shapes=[pltpu.VMEM((_SUBLANE, _LANE), jnp.float32)],
        compiler_params=pltpu.CompilerParams(
            dimension_semantics=("parallel", "arbitrary")
        ),
    )(yh2, yt2)

    # Tiny cross-core combine (2*8*128 elements) + final mean/sqrt in plain JAX.
    return jnp.sqrt(jnp.sum(partials) / jnp.float32(n_elems) + jnp.float32(eps))


if __name__ == "__main__":
    key = jax.random.PRNGKey(0)
    k1, k2 = jax.random.split(key)
    # Small shapes consistent with a typical prediction/target pair.
    yhat = jax.random.normal(k1, (2, 4, 16, 16), dtype=jnp.float32)
    y = jax.random.normal(k2, (2, 4, 16, 16), dtype=jnp.float32)

    loss = rmse_loss(yhat, y)
    jax.block_until_ready(loss)

    # Reference check in plain JAX (same semantics as torch.sqrt(MSE + eps)).
    ref = jnp.sqrt(jnp.mean((yhat - y) ** 2) + 1e-06)
    assert jnp.allclose(loss, ref, rtol=1e-5, atol=1e-6), (loss, ref)

    print("KERNEL_OK")
</pallas_src>

<mosaic_0001>
module attributes {stable_mosaic.version = 11 : i64} {
  func.func @_rmse_partial_kernel(%arg0: i32, %arg1: i32, %arg2: memref<16x128xf32, #tpu.memory_space<vmem>>, %arg3: memref<16x128xf32, #tpu.memory_space<vmem>>, %arg4: memref<1x8x128xf32, #tpu.memory_space<vmem>>, %arg5: memref<8x128xf32, #tpu.memory_space<vmem>>) attributes {dimension_semantics = [#tpu.dimension_semantics<parallel>, #tpu.dimension_semantics<arbitrary>], iteration_bounds = array<i64: 2, 1>, scalar_prefetch = 0 : i64, scratch_operands = 1 : i64, tpu.core_type = #tpu.core_type<tc>, window_params = [{transform_indices = @transform_0, window_bounds = array<i64: 16, 128>}, {transform_indices = @transform_1, window_bounds = array<i64: 16, 128>}, {transform_indices = @transform_2, window_bounds = array<i64: 1, 8, 128>}]} {
    %c0_i32 = arith.constant 0 : i32
    %0 = arith.cmpi eq, %arg1, %c0_i32 : i32
    %1 = arith.extui %0 : i1 to i32
    %c0_i32_0 = arith.constant 0 : i32
    %2 = arith.cmpi ne, %1, %c0_i32_0 : i32
    scf.if %2 {
      %cst = arith.constant 0.000000e+00 : f32
      %20 = vector.broadcast %cst : f32 to vector<8x128xf32>
      %c0_10 = arith.constant 0 : index
      %c0_11 = arith.constant 0 : index
      %21 = vector.load %arg5[%c0_10, %c0_11] : memref<8x128xf32, #tpu.memory_space<vmem>>, vector<8x128xf32>
      tpu.vector_store %arg5[%c0_10, %c0_11], %20 {strides = array<i32>} : memref<8x128xf32, #tpu.memory_space<vmem>>, vector<8x128xf32>,
    } else {
    }
    %c0 = arith.constant 0 : index
    %c0_1 = arith.constant 0 : index
    %3 = vector.load %arg2[%c0, %c0_1] : memref<16x128xf32, #tpu.memory_space<vmem>>, vector<16x128xf32>
    %c0_2 = arith.constant 0 : index
    %c0_3 = arith.constant 0 : index
    %4 = vector.load %arg3[%c0_2, %c0_3] : memref<16x128xf32, #tpu.memory_space<vmem>>, vector<16x128xf32>
    %5 = arith.subf %3, %4 : vector<16x128xf32>
    %6 = arith.mulf %5, %5 : vector<16x128xf32>
    %c1_i32 = arith.constant 1 : i32
    %7 = arith.muli %arg0, %c1_i32 : i32
    %8 = arith.addi %7, %arg1 : i32
    %c2048_i32 = arith.constant 2048 : i32
    %9 = arith.muli %8, %c2048_i32 : i32
    %c2048_i32_4 = arith.constant 2048 : i32
    %10 = arith.addi %9, %c2048_i32_4 : i32
    %c2048_i32_5 = arith.constant 2048 : i32
    %11 = arith.cmpi sle, %10, %c2048_i32_5 : i32
    %12 = arith.extui %11 : i1 to i32
    %c0_i32_6 = arith.constant 0 : i32
    %13 = arith.cmpi ne, %12, %c0_i32_6 : i32
    scf.if %13 {
      %c0_10 = arith.constant 0 : index
      %c0_11 = arith.constant 0 : index
      %20 = vector.load %arg5[%c0_10, %c0_11] : memref<8x128xf32, #tpu.memory_space<vmem>>, vector<8x128xf32>
      %21 = vector.shape_cast %6 : vector<16x128xf32> to vector<2x8x128xf32>
      %cst = arith.constant dense<0.000000e+00> : vector<8x128xf32>
      %22 = vector.multi_reduction <add>, %21, %cst [0] : vector<2x8x128xf32> to vector<8x128xf32>
      %23 = arith.addf %20, %22 : vector<8x128xf32>
      %c0_12 = arith.constant 0 : index
      %c0_13 = arith.constant 0 : index
      %24 = vector.load %arg5[%c0_12, %c0_13] : memref<8x128xf32, #tpu.memory_space<vmem>>, vector<8x128xf32>
      tpu.vector_store %arg5[%c0_12, %c0_13], %23 {strides = array<i32>} : memref<8x128xf32, #tpu.memory_space<vmem>>, vector<8x128xf32>,
    } else {
    }
    %true = arith.constant true
    %14 = arith.xori %11, %true : i1
    %15 = arith.extui %14 : i1 to i32
    %c0_i32_7 = arith.constant 0 : i32
    %16 = arith.cmpi ne, %15, %c0_i32_7 : i32
    scf.if %16 {
      %20 = tpu.iota {dimensions = array<i32: 0>} : vector<16x128xi32>
      %21 = tpu.iota {dimensions = array<i32: 1>} : vector<16x128xi32>
      %c128_i32 = arith.constant 128 : i32
      %22 = vector.broadcast %c128_i32 : i32 to vector<16x128xi32>
      %23 = arith.muli %20, %22 : vector<16x128xi32>
      %24 = vector.broadcast %9 : i32 to vector<16x128xi32>
      %25 = arith.addi %24, %23 : vector<16x128xi32>
      %26 = arith.addi %25, %21 : vector<16x128xi32>
      %c2048_i32_10 = arith.constant 2048 : i32
      %27 = vector.broadcast %c2048_i32_10 : i32 to vector<16x128xi32>
      %28 = arith.cmpi slt, %26, %27 : vector<16x128xi32>
      %cst = arith.constant 0.000000e+00 : f32
      %29 = vector.broadcast %cst : f32 to vector<16x128xf32>
      %30 = arith.select %28, %6, %29 : vector<16x128xi1>, vector<16x128xf32>
      %c0_11 = arith.constant 0 : index
      %c0_12 = arith.constant 0 : index
      %31 = vector.load %arg5[%c0_11, %c0_12] : memref<8x128xf32, #tpu.memory_space<vmem>>, vector<8x128xf32>
      %32 = vector.shape_cast %30 : vector<16x128xf32> to vector<2x8x128xf32>
      %cst_13 = arith.constant dense<0.000000e+00> : vector<8x128xf32>
      %33 = vector.multi_reduction <add>, %32, %cst_13 [0] : vector<2x8x128xf32> to vector<8x128xf32>
      %34 = arith.addf %31, %33 : vector<8x128xf32>
      %c0_14 = arith.constant 0 : index
      %c0_15 = arith.constant 0 : index
      %35 = vector.load %arg5[%c0_14, %c0_15] : memref<8x128xf32, #tpu.memory_space<vmem>>, vector<8x128xf32>
      tpu.vector_store %arg5[%c0_14, %c0_15], %34 {strides = array<i32>} : memref<8x128xf32, #tpu.memory_space<vmem>>, vector<8x128xf32>,
    } else {
    }
    %c0_i32_8 = arith.constant 0 : i32
    %17 = arith.cmpi eq, %arg1, %c0_i32_8 : i32
    %18 = arith.extui %17 : i1 to i32
    %c0_i32_9 = arith.constant 0 : i32
    %19 = arith.cmpi ne, %18, %c0_i32_9 : i32
    scf.if %19 {
      %c0_10 = arith.constant 0 : index
      %c0_11 = arith.constant 0 : index
      %20 = vector.load %arg5[%c0_10, %c0_11] : memref<8x128xf32, #tpu.memory_space<vmem>>, vector<8x128xf32>
      %21 = vector.shape_cast %20 : vector<8x128xf32> to vector<1x8x128xf32>
      %c0_12 = arith.constant 0 : index
      %c0_13 = arith.constant 0 : index
      %c0_14 = arith.constant 0 : index
      %22 = vector.load %arg4[%c0_12, %c0_13, %c0_14] : memref<1x8x128xf32, #tpu.memory_space<vmem>>, vector<1x8x128xf32>
      tpu.vector_store %arg4[%c0_12, %c0_13, %c0_14], %21 {strides = array<i32>} : memref<1x8x128xf32, #tpu.memory_space<vmem>>, vector<1x8x128xf32>,
    } else {
    }
    return
  }
  func.func @transform_0(%arg0: i32, %arg1: i32) -> (i32, i32) {
    %c1_i32 = arith.constant 1 : i32
    %0 = arith.muli %arg0, %c1_i32 : i32
    %1 = arith.addi %0, %arg1 : i32
    %c0_i32 = arith.constant 0 : i32
    %2 = arith.minsi %1, %c0_i32 : i32
    %c0_i32_0 = arith.constant 0 : i32
    %c0_i32_1 = arith.constant 0 : i32
    return %2, %c0_i32_0 : i32, i32
  }
  func.func @transform_1(%arg0: i32, %arg1: i32) -> (i32, i32) {
    %c1_i32 = arith.constant 1 : i32
    %0 = arith.muli %arg0, %c1_i32 : i32
    %1 = arith.addi %0, %arg1 : i32
    %c0_i32 = arith.constant 0 : i32
    %2 = arith.minsi %1, %c0_i32 : i32
    %c0_i32_0 = arith.constant 0 : i32
    %c0_i32_1 = arith.constant 0 : i32
    return %2, %c0_i32_0 : i32, i32
  }
  func.func @transform_2(%arg0: i32, %arg1: i32) -> (i32, i32, i32) {
    %c0_i32 = arith.constant 0 : i32
    %c0_i32_0 = arith.constant 0 : i32
    %c0_i32_1 = arith.constant 0 : i32
    return %arg0, %c0_i32, %c0_i32_0 : i32, i32, i32
  }
}

</mosaic_0001>

<bundles_post_ra>
// kernel: tpu_custom_call.1
= control target key start
LH: loop header
LB: loop body
LE: loop exit
PB: predicated region body
PF: predicated region fallthrough
CT: control target
= control target key end

     0   :  { %7 = vsyncpa [#allocation4], 0  ;;  %s924_s0 = inlined_call_operand.hbm [shape: f32[16,128], index: 0, kind: input, shape index: {}]   ;;  %s925_s1 = inlined_call_operand.hbm [shape: f32[16,128], index: 1, kind: input, shape index: {}]   ;;  %s926_s2 = inlined_call_operand.hbm [shape: f32[2,8,128], index: 2, kind: output, shape index: {}]  }
   0x1   :  { %9 = vsyncpa [#allocation4 + $0x1], 0 }
   0x2   :  { %10 = vsyncpa [#allocation7], 0 }
   0x3   :  { %12 = vsyncpa [#allocation7 + $0x1], 0 }
   0x4   :  { %13 = vsyncpa [#allocation5], 0 }
   0x5   :  { %15 = vsyncpa [#allocation5 + $0x1], 0  ;;  %s715_s9 = smov 0   ;;  %s717_s10 = smov 0  }
   0x6   :  { %s719_s11 = smov 0   ;;  %s721_s12 = smov 0  }
   0x7   :  { %s723_s13 = smov 0   ;;  %s725_s14 = smov 0  }
   0x8   :  { %s727_s15 = smov 0   ;;  %s729_s16 = smov 0  }
   0x9 LB: > { %s408_s17 = sadd.s32 4294967295, %s692_s16   ;;  %s409_s18 = sadd.s32 4294967294, %s692_s16   ;;  %s692_s16 = sphi %s729_s16, %s21_s16   ;;  %s688_s15 = sphi %s727_s15, %s945_s15   ;;  %s684_s14 = sphi %s725_s14, %s944_s14   ;;  %s680_s13 = sphi %s723_s13, %s914_s13   ;;  %s676_s12 = sphi %s721_s12, %s943_s12   ;;  %s672_s11 = sphi %s719_s11, %s942_s11   ;;  %s668_s10 = sphi %s717_s10, %s941_s10   ;;  %s664_s9 = sphi %s715_s9, %s940_s9  }
   0xa   : > { %s33_s19 = sadd.s32 1, %s688_s15  ;;  %p661_p1 = scmp.ne.s32.totalorder %s680_s13, 0 }
   0xb   : > { %p35_p0 = scmp.ge.s32.totalorder %s33_s19, 2  ;;  %p54_p2 = scmp.eq.s32.totalorder %s692_s16, 0 }
   0xc   : > { %p59_p3 = scmp.ne.s32.totalorder %s680_s13, %s676_s12  ;;  %p60_p5 = scmp.eq.s32.totalorder %s408_s17, 0 }
   0xd   : > { %s947_s19 = smov (%p35_p0, %s33_s19), 0  ;;  %p761_p4 = por %p661_p1, %p54_p2 }
   0xe   : > { %p765_p6 = por %p60_p5, %p59_p3  ;;  %s101_s22 = ssub.s32 %s688_s15, %s947_s19 }
   0xf   : > { %p102_p7 = scmp.eq.s32.totalorder %s101_s22, 0  ;;  %s104_s23 = sadd.s32 1, %s672_s11 }
  0x10   : > { %s930_s21 = scalar_select %p765_p6, 1, 0 }
  0x11   : > { %s773_s24 = scalar_select %p102_p7, %s672_s11, %s104_s23  }
  0x12   : > { %p114_p8 = scmp.ne.s32.totalorder %s672_s11, %s668_s10  ;;  %p115_p9 = scmp.eq.s32.totalorder %s408_s17, 1 }
  0x13   : > { %p120_p10 = scmp.ne.s32.totalorder %s668_s10, %s664_s9  ;;  %p121_p11 = scmp.eq.s32.totalorder %s409_s18, 1 }
  0x14   : > { %p779_p12 = por %p115_p9, %p114_p8  ;;  %p448_p1 = scmp.lt.s32.totalorder %s692_s16, 2 }
  0x15   : > { %p784_p0 = por %p121_p11, %p120_p10  ;;  %s694_s27 = smov [#allocation3]  }
  0x16   : > { %s931_s25 = scalar_select %p779_p12, 1, 0 }
  0x17   : > { %s932_s26 = scalar_select %p784_p0, 1, 0 }
  0x18   : > { %s155_s28 = sshll.u32 %s694_s27, 4  ;;  %p791_p2 = pnand %p448_p1, %p761_p4  ;;  %s156_s28 = int_to_ptr.vmem [resolvable:$true] %s155_s28 }
  0x19   : > { %s525_s4 = scalar_lea.hbm %s924_s0, 256 }
  0x1a   : > { %p526_p3 = scmp.ne.s32.totalorder %s924_s0, %s525_s4  ;;  %p527_p5 = pneg %p791_p2 }
  0x1b   : > { %p532_p8 = scmp.lt.u32.totalorder %s525_s4, %s525_s4  ;;  %p534_p9 = scmp.lt.u32.totalorder %s525_s4, %s924_s0 }
  0x1c   : > { %p528_p7 = pnand %p527_p5, %p526_p3 }
  0x1d   : > { %p535_p10 = por %p534_p9, %p532_p8 }
  0x1e   : > { %p529_p4 = pneg %p528_p7 }
  0x20   : > { %p536_p11 = pnand %p535_p10, %p529_p4 }
  0x22   : > { %539 = shalt.err (!%p536_p11)
}
  0x23   : > { %s540_s12 = scalar_lea.vmem %s156_s28, 256  ;;  %s547_s17 = scalar_lea.vmem %s156_s28, 512 }
  0x24   : > { %p541_p1 = scmp.ne.s32.totalorder %s156_s28, %s540_s12  ;;  %p548_p12 = scmp.lt.s32.totalorder %s156_s28, %s156_s28 }
  0x25   : > { %p549_p6 = scmp.lt.s32.totalorder %s547_s17, %s540_s12 }
  0x26   : > { %p543_p13 = pnand %p541_p1, %p527_p5 }
  0x27   : > { %p550_p3 = por %p549_p6, %p548_p12 }
  0x28   : > { %p544_p0 = pneg %p543_p13 }
  0x2a   : > { %p551_p7 = pnand %p550_p3, %p544_p0 }
  0x2c   : > { %554 = shalt.err (!%p551_p7)
}
  0x2d   : > { %s695_s18 = smov 128   ;;  %s696_s20 = smov 8  }
  0x2e   : > { %440 = dma.hbm_to_vmem [thread:$0]  (!%p791_p2), %s924_s0, 256, %s156_s28, [#allocation4], %s695_s18, %s695_s18, %s696_s20  }
  0x2f   : > { %p418_p13 = scmp.ge.s32.totalorder %s692_s16, 1  ;;  %p187_p4 = scmp.lt.s32.totalorder %s692_s16, 3 }
  0x30   : > { %s697_s30 = smov [#allocation6]   ;;  %s555_s6 = scalar_lea.hbm %s925_s1, 256 }
  0x31   : > { %p822_p8 = pnand %p418_p13, %p187_p4  ;;  %s179_s3 = sshll.u32 %s697_s30, 4  ;;  %s180_s3 = int_to_ptr.vmem [resolvable:$true] %s179_s3 }
  0x32   : > { %p556_p6 = scmp.ne.s32.totalorder %s925_s1, %s555_s6  ;;  %p562_p9 = scmp.lt.u32.totalorder %s555_s6, %s555_s6 }
  0x33   : > { %s934_s27 = scalar_select %p822_p8, 1, 0 }
  0x34   : > { %p558_p12 = pnand %p556_p6, %p527_p5  ;;  %p564_p10 = scmp.lt.u32.totalorder %s555_s6, %s925_s1 }
  0x36   : > { %p559_p0 = pneg %p558_p12  ;;  %p565_p11 = por %p564_p10, %p562_p9 }
  0x38   : > { %p566_p1 = pnand %p565_p11, %p559_p0 }
  0x3a   : > { %569 = shalt.err (!%p566_p1)
}
  0x3b   : > { %s570_s17 = scalar_lea.vmem %s180_s3, 256  ;;  %s577_s22 = scalar_lea.vmem %s180_s3, 512 }
  0x3c   : > { %p571_p3 = scmp.ne.s32.totalorder %s180_s3, %s570_s17  ;;  %p578_p4 = scmp.lt.s32.totalorder %s180_s3, %s180_s3 }
  0x3d   : > { %p579_p8 = scmp.lt.s32.totalorder %s577_s22, %s570_s17 }
  0x3e   : > { %p573_p7 = pnand %p571_p3, %p527_p5 }
  0x3f   : > { %p580_p6 = por %p579_p8, %p578_p4 }
  0x40   : > { %p574_p13 = pneg %p573_p7 }
  0x42   : > { %p581_p12 = pnand %p580_p6, %p574_p13 }
  0x44   : > { %584 = shalt.err (!%p581_p12)
}
  0x45   : > { %443 = dma.hbm_to_vmem [thread:$0]  (!%p791_p2), %s925_s1, 256, %s180_s3, [#allocation7], %s695_s18, %s695_s18, %s696_s20  }
  0x46   : > { %p935_p0 = scmp.ne.s32.totalorder %s934_s27, 0 }
  0x47   : > { %s193_s4 = sand.u32 (!%p935_p0), 1, %s680_s13   ;;  %p936_p5 = scmp.ne.s32.totalorder (!%p935_p0), %s930_s21, 0 }
  0x48   : > { %191 = sbr.rel (%p935_p0) target bundleno = 139 (0x8b), region = 28  ;;  %s419_s5 = sshll.u32 (!%p935_p0), %s193_s4, 4 }
  0x49   : > { %s194_s6 = scalar_lea.sflag (!%p935_p0), [#allocation4], %s193_s4  ;;  %s197_s7 = scalar_lea.vmem (!%p935_p0), [#allocation3], %s419_s5 }
  0x4f   : > { %650 = dma.done.wait (%p936_p5), %s194_s6, 256  }
  0x50   : > { %652 = vsyncadd (%p936_p5), %s194_s6, 4294967040  ;;  %s203_s29 = scalar_lea.sflag [#allocation7], %s193_s4  ;;  %s206_s8 = scalar_lea.vmem [#allocation6], %s419_s5 }
  0x51   : > { %654 = dma.done.wait (%p936_p5), %s203_s29, 256  }
  0x52   : > { %656 = vsyncadd (%p936_p5), %s203_s29, 4294967040  ;;  %s229_s18 = sand.u32 1, %s668_s10   ;;  %s422_s20 = sshll.u32 %s684_s14, 11  ;;  %v698_v0 = vmov 0.0   ;;  %v245_v1 = vld [vmem:[%s197_s7] sm:$0xff]  ;;  %v246_v2 = vld [vmem:[%s197_s7 + $0x8] sm:$0xff] }
  0x53   : > { %s864_s27 = sshll.u32 %s229_s18, 3  ;;  %244 = vst [vmem:[#allocation2] sm:$0xff] %v698_v0  ;;  %s255_s3 = sadd.s32 2048, %s422_s20  ;;  %v247_v3 = vld [vmem:[%s206_s8] sm:$0xff]  ;;  %v248_v4 = vld [vmem:[%s206_s8 + $0x8] sm:$0xff] }
  0x54   : > { %v249_v5 = vsub.f32 %v245_v1, %v247_v3  ;;  %v250_v6 = vsub.f32 %v246_v2, %v248_v4  ;;  %s231_s21 = scalar_lea.vmem [#allocation8], %s864_s27  ;;  %p423_p2 = scmp.gt.s32.totalorder %s255_s3, 2048 }
  0x56   : > { %v251_v7 = vmul.f32 %v249_v5, %v249_v5  ;;  %v252_v8 = vmul.f32 %v250_v6, %v250_v6  ;;  %259 = sbr.rel (%p423_p2) target bundleno = 94 (0x5e), region = 44 }
  0x58   : > { %v261_v10 = vadd.f32 (!%p423_p2), %v252_v8, %v251_v7 }
  0x5a   : > { %v260_v9 = vld [vmem:[#allocation2] sm:$0xff] (!%p423_p2) }
  0x5b   : > { %v262_v11 = vadd.f32 (!%p423_p2), %v261_v10, %v260_v9 }
  0x5d   : > { %263 = vst [vmem:[#allocation2] sm:$0xff] %v262_v11 }
  0x5e PF: > { %p424_p8 = scmp.le.s32.totalorder %s255_s3, 2048 }
  0x5f   : > { %v268_v12 = vlaneseq (!%p424_p8)  ;;  %v275_v14 = vstv (!%p424_p8), %s422_s20 }
  0x60   : > { %267 = sbr.rel (%p424_p8) target bundleno = 114 (0x72), region = 48 }
  0x61   : > { %v269_v13 = vshrl.u32 (!%p424_p8), %v268_v12, 7  ;;  %v272_v16 = vand.u32 (!%p424_p8), 127, %v268_v12 }
  0x63   : > { %v270_v15 = vadd.s32 (!%p424_p8), 8, %v269_v13  ;;  %v273_v17 = vmul.u32 (!%p424_p8), 128, %v269_v13 }
  0x64   : > { %v284_v25 = vld [vmem:[#allocation2] sm:$0xff] (!%p424_p8) }
  0x65   : > { %v274_v18 = vmul.u32 (!%p424_p8), 128, %v270_v15  ;;  %v276_v19 = vadd.s32 (!%p424_p8), %v275_v14, %v273_v17 }
  0x67   : > { %v277_v20 = vadd.s32 %v275_v14, %v274_v18  ;;  %v278_v21 = vadd.s32 %v276_v19, %v272_v16 }
  0x69   : > { %v279_v22 = vadd.s32 %v277_v20, %v272_v16  ;;  %vm280_vm0 = vcmp.lt.s32.totalorder %v278_v21, 2048 }
  0x6a   : > { %v282_v23 = vsel %vm280_vm0, %v251_v7, 0.0 }
  0x6b   : > { %vm281_vm1 = vcmp.lt.s32.totalorder %v279_v22, 2048 }
  0x6c   : > { %v283_v24 = vsel %vm281_vm1, %v252_v8, 0.0 }
  0x6d   : > { %v285_v26 = vadd.f32 %v283_v24, %v282_v23 }
  0x6f   : > { %v286_v27 = vadd.f32 %v285_v26, %v284_v25 }
  0x71   : > { %287 = vst [vmem:[#allocation2] sm:$0xff] %v286_v27 }
  0x72 PF: > { %s426_s28 = sshll.u32 %s684_s14, 7  ;;  %s307_s23 = sshll.u32 %s231_s21, 4  ;;  %s308_s23 = int_to_ptr.vmem [resolvable:$true] %s307_s23 }
  0x73   : > { %s873_s22 = scalar_lea.hbm %s926_s2, %s426_s28  ;;  %s294_s30 = scalar_lea.sflag [#allocation5], %s229_s18 }
  0x74   : > { %s585_s4 = scalar_lea.vmem %s308_s23, 128  ;;  %p937_p10 = scmp.ne.s32.totalorder %s931_s25, 0 }
  0x75   : > { %p586_p9 = scmp.ne.s32.totalorder %s308_s23, %s585_s4  ;;  %s699_s5 = smov [#allocation8]  }
  0x76   : > { %s589_s6 = sshll.u32 %s699_s5, 4  ;;  %s590_s6 = int_to_ptr.vmem [resolvable:$false] %s589_s6 }
  0x77   : > { %p587_p11 = pnand %p586_p9, %p937_p10  ;;  %s591_s14 = scalar_lea.vmem %s590_s6, 256 }
  0x78   : > { %v291_v28 = vld [vmem:[#allocation2] sm:$0xff]  ;;  %p592_p3 = scmp.lt.s32.totalorder %s308_s23, %s590_s6  ;;  %p593_p7 = scmp.lt.s32.totalorder %s591_s14, %s585_s4 }
  0x79   : > { %292 = vst [vmem:[%s231_s21] sm:$0xff] %v291_v28  ;;  %p588_p1 = pneg %p587_p11 }
  0x7a   : > { %p594_p13 = por %p593_p7, %p592_p3 }
  0x7c   : > { %p595_p4 = pnand %p594_p13, %p588_p1 }
  0x7e   : > { %598 = shalt.err (!%p595_p4)
}
  0x7f   : > { %s599_s7 = scalar_lea.hbm %s873_s22, 128  ;;  %s603_s18 = scalar_lea.hbm %s926_s2, 256 }
  0x80   : > { %p600_p6 = scmp.ne.s32.totalorder %s873_s22, %s599_s7  ;;  %p604_p5 = scmp.lt.u32.totalorder %s873_s22, %s926_s2 }
  0x81   : > { %p605_p2 = scmp.lt.u32.totalorder %s603_s18, %s599_s7  ;;  %p607_p9 = scmp.lt.u32.totalorder %s599_s7, %s873_s22 }
  0x82   : > { %p601_p12 = pnand %p600_p6, %p937_p10 }
  0x83   : > { %p606_p8 = por %p605_p2, %p604_p5 }
  0x84   : > { %p602_p0 = pneg %p601_p12 }
  0x85   : > { %p608_p11 = por %p607_p9, %p606_p8 }
  0x87   : > { %p609_p1 = pnand %p608_p11, %p602_p0 }
  0x89   : > { %612 = shalt.err (!%p609_p1)
}
  0x8a   : > { %435 = dma.vmem_to_hbm [thread:$0]  (%p937_p10), %s308_s23, 128, %s873_s22, %s294_s30  }
  0x8b PF: > { %s319_s3 = sand.u32 1, %s664_s9   ;;  %p938_p3 = scmp.ne.s32.totalorder %s932_s26, 0 }
  0x8c   : > { %p939_p7 = scmp.ge.s32.totalorder %s692_s16, 2  ;;  %s320_s21 = scalar_lea.sflag [#allocation5], %s319_s3 }
  0x8e   : > { %p445_p13 = pnand %p939_p7, %p938_p3 }
  0x90   : > { %658 = dma.done.wait (!%p445_p13), %s320_s21, 128  }
  0x91   : > { %660 = vsyncadd (!%p445_p13), %s320_s21, 4294967168  ;;  %s21_s16 = sadd.s32 1, %s692_s16   ;;  %s940_s9 = smov %s668_s10 }
  0x92   : > { %p18_p4 = scmp.ge.s32.totalorder %s21_s16, 4   ;;  %s941_s10 = smov %s672_s11 }
  0x93   : > { %s942_s11 = smov %s773_s24  ;;  %s943_s12 = smov %s680_s13 }
  0x94   : > { %s914_s13 = smov 0   ;;  %s944_s14 = smov %s688_s15 }
  0x95   : > { %s945_s15 = smov %s947_s19  ;;  %20 = sbr.rel (!%p18_p4) target bundleno = 9 (0x9), region = 102 }
  0x9c   :  { %325 = vsyncpa [#allocation4], 1 }
  0x9d   :  { %327 = vsyncpa [#allocation4 + $0x1], 1 }
  0x9e   :  { %328 = vsyncpa [#allocation7], 1 }
  0x9f   :  { %330 = vsyncpa [#allocation7 + $0x1], 1 }
  0xa0   :  { %331 = vsyncpa [#allocation5], 1 }
  0xa1   :  { %333 = vsyncpa [#allocation5 + $0x1], 1 }

</bundles_post_ra>
